<compile_context>
chip_gen: v7x
topology: tpu7x:2x2x1
jax: 0.10.0
libtpu: 0.0.40
codegen_flags: <defaults>
</compile_context>

<pallas_src>
import jax
import jax.numpy as jnp
from jax.experimental import pallas as pl
from jax.experimental.pallas import tpu as pltpu


def _skew_small_kernel(m_ref, o_ref):
    """Whole-matrix path: one select + one XLU transpose + one subtract."""
    m = m_ref[...]
    row = jax.lax.broadcasted_iota(jnp.int32, m.shape, 0)
    col = jax.lax.broadcasted_iota(jnp.int32, m.shape, 1)
    upper = jnp.where(col > row, m, jnp.zeros_like(m))
    o_ref[...] = upper - upper.T


def _skew_tiled_kernel(a_ref, o_ref):
    """Tiled path, single input operand.

    The input BlockSpec always delivers the upper-triangle block
    A[min(i,j), max(i,j)], so:
      i < j : output tile is strictly upper           -> copy
      i > j : output tile is strictly lower           -> -A[j,i].T
      i == j: diagonal tile, mask with LOCAL iotas    -> upper - upper.T
    """
    i = pl.program_id(0)
    j = pl.program_id(1)

    @pl.when(i < j)
    def _():
        o_ref[...] = a_ref[...]

    @pl.when(i > j)
    def _():
        o_ref[...] = -a_ref[...].T

    @pl.when(i == j)
    def _():
        a = a_ref[...]
        row = jax.lax.broadcasted_iota(jnp.int32, a.shape, 0)
        col = jax.lax.broadcasted_iota(jnp.int32, a.shape, 1)
        upper = jnp.where(col > row, a, jnp.zeros_like(a))
        o_ref[...] = upper - upper.T


def skew_symmetric_matrix(mat: jax.Array, *, tile: int = 512) -> jax.Array:
    """Pallas forward of SkewSymmetricMatrix: triu(mat) - triu(mat).T."""
    n = mat.shape[0]
    assert mat.shape == (n, n), "expected a square matrix"
    assert tile >= 128 and tile % 128 == 0, "tile must be a multiple of 128"

    # Small path: whole matrix resident in VMEM, no pipelining machinery.
    if n <= 512:
        return pl.pallas_call(
            _skew_small_kernel,
            out_shape=jax.ShapeDtypeStruct((n, n), mat.dtype),
            in_specs=[pl.BlockSpec(memory_space=pltpu.MemorySpace.VMEM)],
            out_specs=pl.BlockSpec(memory_space=pltpu.MemorySpace.VMEM),
        )(mat)

    # Ragged n: pad to a tile multiple in the wrapper (robust on all
    # generations; avoids any whole-matrix-in-VMEM fallback).
    n_pad = pl.cdiv(n, tile) * tile
    padded = n_pad != n
    m = jnp.pad(mat, ((0, n_pad - n), (0, n_pad - n))) if padded else mat

    g = n_pad // tile
    out = pl.pallas_call(
        _skew_tiled_kernel,
        out_shape=jax.ShapeDtypeStruct((n_pad, n_pad), mat.dtype),
        grid=(g, g),
        in_specs=[
            # Single operand: always the upper-triangle block (min, max).
            pl.BlockSpec(
                (tile, tile),
                lambda i, j: (jnp.minimum(i, j), jnp.maximum(i, j)),
            ),
        ],
        out_specs=pl.BlockSpec((tile, tile), lambda i, j: (i, j)),
        compiler_params=pltpu.CompilerParams(
            # Shards the tile grid across both TensorCores on v7x; no-op on
            # single-TC v5e/v6e.
            dimension_semantics=("parallel", "parallel"),
        ),
    )(m)

    return out[:n, :n] if padded else out


def _reference(mat: jax.Array) -> jax.Array:
    upper = jnp.triu(mat)
    return upper - upper.T


if __name__ == "__main__":
    key = jax.random.PRNGKey(0)
    k_small, k_tiled, k_ragged = jax.random.split(key, 3)

    # Small path (matches nn.Parameter(torch.randn(n, n)) with n = 32).
    n_small = 32
    mat_small = jax.random.normal(k_small, (n_small, n_small), dtype=jnp.float32)
    out_small = jax.block_until_ready(skew_symmetric_matrix(mat_small))
    assert out_small.shape == (n_small, n_small)
    assert jnp.allclose(out_small, _reference(mat_small), atol=1e-6)
    assert jnp.allclose(out_small, -out_small.T, atol=1e-6)

    # Tiled path: default tile=512, 2x2 grid -> exercises the copy,
    # negate-transpose and diagonal-mask tile classes.
    n_tiled = 1024
    mat_tiled = jax.random.normal(k_tiled, (n_tiled, n_tiled), dtype=jnp.float32)
    out_tiled = jax.block_until_ready(skew_symmetric_matrix(mat_tiled))
    assert out_tiled.shape == (n_tiled, n_tiled)
    assert jnp.allclose(out_tiled, _reference(mat_tiled), atol=1e-6)
    assert jnp.allclose(out_tiled, -out_tiled.T, atol=1e-6)

    # Ragged path: n not a tile multiple -> pad-and-slice wrapper path.
    n_ragged = 700
    mat_ragged = jax.random.normal(k_ragged, (n_ragged, n_ragged), dtype=jnp.float32)
    out_ragged = jax.block_until_ready(skew_symmetric_matrix(mat_ragged))
    assert out_ragged.shape == (n_ragged, n_ragged)
    assert jnp.allclose(out_ragged, _reference(mat_ragged), atol=1e-6)
    assert jnp.allclose(out_ragged, -out_ragged.T, atol=1e-6)

    print("KERNEL_OK")
</pallas_src>

<mosaic_0001>
module attributes {stable_mosaic.version = 11 : i64} {
  func.func @_skew_small_kernel(%arg0: memref<32x32xf32, #tpu.memory_space<vmem>>, %arg1: memref<32x32xf32, #tpu.memory_space<vmem>>) attributes {dimension_semantics = [], scalar_prefetch = 0 : i64, scratch_operands = 0 : i64, tpu.core_type = #tpu.core_type<tc>} {
    %c0 = arith.constant 0 : index
    %c0_0 = arith.constant 0 : index
    %0 = vector.load %arg0[%c0, %c0_0] : memref<32x32xf32, #tpu.memory_space<vmem>>, vector<32x32xf32>
    %1 = tpu.iota {dimensions = array<i32: 0>} : vector<32x32xi32>
    %2 = tpu.iota {dimensions = array<i32: 1>} : vector<32x32xi32>
    %3 = arith.cmpi sgt, %2, %1 : vector<32x32xi32>
    %cst = arith.constant 0.000000e+00 : f32
    %4 = vector.broadcast %cst : f32 to vector<32x32xf32>
    %5 = arith.select %3, %0, %4 : vector<32x32xi1>, vector<32x32xf32>
    %6 = tpu.transpose %5, [1, 0] : vector<32x32xf32> -> vector<32x32xf32>
    %7 = arith.subf %5, %6 : vector<32x32xf32>
    %c0_1 = arith.constant 0 : index
    %c0_2 = arith.constant 0 : index
    %8 = vector.load %arg1[%c0_1, %c0_2] : memref<32x32xf32, #tpu.memory_space<vmem>>, vector<32x32xf32>
    tpu.vector_store %arg1[%c0_1, %c0_2], %7 {strides = array<i32>} : memref<32x32xf32, #tpu.memory_space<vmem>>, vector<32x32xf32>,
    return
  }
}

</mosaic_0001>

<bundles_post_ra>
// kernel: tpu_custom_call.1
= control target key start
LH: loop header
LB: loop body
LE: loop exit
PB: predicated region body
PF: predicated region fallthrough
CT: control target
= control target key end

     0   :  { %6 = vsyncpa [#allocation3], 0  ;;  %s197_s0 = inlined_call_operand.hbm [shape: f32[32,32], index: 0, kind: input, shape index: {}]   ;;  %s198_s1 = inlined_call_operand.hbm [shape: f32[32,32], index: 1, kind: output, shape index: {}]  }
   0x1   :  { %7 = vsyncpa [#allocation4], 0  ;;  %s153_s6 = smov [#allocation2]   ;;  %s105_s10 = scalar_lea.hbm %s197_s0, 512 }
   0x2   :  { %s13_s7 = sshll.u32 %s153_s6, 4  ;;  %p106_p0 = scmp.ne.s32.totalorder %s197_s0, %s105_s10  ;;  %s14_s7 = int_to_ptr.vmem [resolvable:$true] %s13_s7 }
   0x3   :  { %p109_p1 = scmp.lt.u32.totalorder %s105_s10, %s197_s0 }
   0x5   :  { %p111_p2 = pnand %p109_p1, %p106_p0 }
   0x7   :  { %114 = shalt.err (!%p111_p2)
}
   0x8   :  { %s115_s15 = scalar_lea.vmem %s14_s7, 512  ;;  %p120_p4 = scmp.lt.s32.totalorder %s14_s7, %s14_s7 }
   0x9   :  { %p116_p3 = scmp.ne.s32.totalorder %s14_s7, %s115_s15  ;;  %p121_p5 = scmp.lt.s32.totalorder %s115_s15, %s115_s15 }
   0xb   :  { %p122_p6 = por %p121_p5, %p120_p4 }
   0xd   :  { %p123_p7 = pnand %p122_p6, %p116_p3 }
   0xf   :  { %126 = shalt.err (!%p123_p7)
}
  0x10   :  { %s154_s16 = smov 128   ;;  %s155_s17 = smov 8  }
  0x11   :  { %19 = dma.hbm_to_vmem [thread:$0]  %s197_s0, 512, %s14_s7, [#allocation3], %s154_s16, %s154_s16, %s155_s17  }
  0x12   :  { %149 = dma.done.wait [#allocation3], 512  }
  0x13   :  { %150 = vsyncadd [#allocation3], 4294966784  ;;  %v27_v0 = vlaneseq  ;;  %v23_v4 = vld [vmem:[#allocation2] sm:$0xff]  ;;  %v24_v5 = vld [vmem:[#allocation2 + $0x8] sm:$0xff]  ;;  %vm78_vm4 = vcmask 261120   ;;  %s156_s0 = smov [#allocation5]  }
  0x14   :  { %v25_v9 = vld [vmem:[#allocation2 + $0x10] sm:$0xff]  ;;  %v26_v12 = vld [vmem:[#allocation2 + $0x18] sm:$0xff]  ;;  %s88_s20 = sshll.u32 %s156_s0, 4  ;;  %s89_s20 = int_to_ptr.vmem [resolvable:$true] %s88_s20 }
  0x15   :  { %v28_v1 = vshrl.u32 %v27_v0, 7  ;;  %v33_v2 = vand.u32 127, %v27_v0  ;;  %s127_s21 = scalar_lea.vmem %s89_s20, 512  ;;  %p132_p9 = scmp.lt.s32.totalorder %s89_s20, %s89_s20 }
  0x16   :  { %p128_p8 = scmp.ne.s32.totalorder %s89_s20, %s127_s21  ;;  %p133_p10 = scmp.lt.s32.totalorder %s127_s21, %s127_s21 }
  0x17   :  { %v29_v3 = vadd.s32 8, %v28_v1  ;;  %vm34_vm0 = vcmp.gt.s32.totalorder %v33_v2, %v28_v1  ;;  %v30_v6 = vadd.s32 16, %v28_v1  ;;  %v31_v10 = vadd.s32 24, %v28_v1 }
  0x18   :  { %v38_v7 = vsel %vm34_vm0, %v23_v4, 0.0  ;;  %p134_p11 = por %p133_p10, %p132_p9 }
  0x19   :  { %vm35_vm1 = vcmp.gt.s32.totalorder %v33_v2, %v29_v3  ;;  %42 = vxpose.xlu0.b32.start [1/4] (short) (narrow) %v38_v7, 32  ;;  %vm36_vm2 = vcmp.gt.s32.totalorder %v33_v2, %v30_v6  ;;  %vm37_vm3 = vcmp.gt.s32.totalorder %v33_v2, %v31_v10 }
  0x1a   :  { %v39_v8 = vsel %vm35_vm1, %v24_v5, 0.0  ;;  %v40_v11 = vsel %vm36_vm2, %v25_v9, 0.0  ;;  %v41_v13 = vsel %vm37_vm3, %v26_v12, 0.0  ;;  %p135_p12 = pnand %p134_p11, %p128_p8 }
  0x1d   :  { %43 = vxpose.xlu0.b32.cont [2/4] (short) (narrow) %v39_v8, 32 }
  0x21   :  { %44 = vxpose.xlu0.b32.cont [3/4] (short) (narrow) %v40_v11, 32 }
  0x25   :  { %45 = vxpose.xlu0.b32.end [4/4] (short) (narrow) %v41_v13, 32 }
  0x99   :  { %v58_v14 = vpop.trf.xlu0 }
  0x9a   :  { %v74_v15 = vsub.f32 %v38_v7, %v58_v14 }
  0x9c   :  { %79 = vst.msk [vmem:[#allocation5] sm:$0xff] %vm78_vm4, %v74_v15 }
  0x9d   :  { %v59_v16 = vpop.trf.xlu0 }
  0x9e   :  { %v75_v17 = vsub.f32 %v39_v8, %v59_v16 }
  0xa0   :  { %80 = vst.msk [vmem:[#allocation5 + $0x8] sm:$0xff] %vm78_vm4, %v75_v17 }
  0xa1   :  { %v60_v18 = vpop.trf.xlu0 }
  0xa2   :  { %v76_v19 = vsub.f32 %v40_v11, %v60_v18 }
  0xa4   :  { %81 = vst.msk [vmem:[#allocation5 + $0x10] sm:$0xff] %vm78_vm4, %v76_v19 }
  0xa5   :  { %v61_v20 = vpop.trf.xlu0 }
  0xa6   :  { %v77_v21 = vsub.f32 %v41_v13, %v61_v20 }
  0xa8   :  { %82 = vst.msk [vmem:[#allocation5 + $0x18] sm:$0xff] %vm78_vm4, %v77_v21 }
  0xa9   :  { %138 = shalt.err (!%p135_p12)
}
  0xaa   :  { %s139_s24 = scalar_lea.hbm %s198_s1, 512 }
  0xab   :  { %p140_p13 = scmp.ne.s32.totalorder %s198_s1, %s139_s24  ;;  %p143_p0 = scmp.lt.u32.totalorder %s139_s24, %s198_s1 }
  0xad   :  { %p145_p1 = pnand %p143_p0, %p140_p13 }
  0xaf   :  { %148 = shalt.err (!%p145_p1)
}
  0xb0   :  { %94 = dma.vmem_to_hbm [thread:$0]  %s89_s20, 512, %s198_s1, [#allocation4], %s154_s16, %s154_s16, %s155_s17  }
  0xb1   :  { %151 = dma.done.wait [#allocation4], 512  }
  0xb2   :  { %152 = vsyncadd [#allocation4], 4294966784 }
  0xb3   :  { %98 = vsyncpa [#allocation3], 1 }
  0xb4   :  { %99 = vsyncpa [#allocation4], 1 }

</bundles_post_ra>
